<compile_context>
chip_gen: v7x
topology: tpu7x:2x2x1
jax: 0.10.0
libtpu: 0.0.40
codegen_flags: <defaults>
</compile_context>

<pallas_src>
import functools

import jax
import jax.numpy as jnp
from jax.experimental import pallas as pl
from jax.experimental.pallas import tpu as pltpu


# ------------------------------ kernels -------------------------------------

def qkv_proj_kernel(x_ref, wq_ref, bq_ref, wkv_ref, bkv_ref, q_ref, kv_ref):
    """Q = x @ Wq + bq (softmax scale pre-folded into Wq/bq), KV = x @ Wkv + bkv."""
    x = x_ref[0]                                               # (tile_n, C)
    q = jnp.dot(x, wq_ref[...], preferred_element_type=jnp.float32)
    q = q + bq_ref[...].astype(jnp.float32)                    # (tile_n, C)  f32
    kv = jnp.dot(x, wkv_ref[...], preferred_element_type=jnp.float32)
    kv = kv + bkv_ref[...].astype(jnp.float32)                 # (tile_n, 2C) f32
    q_ref[0] = q.astype(q_ref.dtype)
    kv_ref[0] = kv.astype(kv_ref.dtype)


def flash_attn_kernel(q_ref, kv_ref, x_ref, wproj_ref, bproj_ref,
                      gamma_ref, beta_ref, o_ref, m_scr, l_scr, acc_scr,
                      *, num_heads, eps):
    """One (batch, q-tile, kv-tile) step: online softmax, then at the last kv
    step the fused output projection + residual + LayerNorm epilogue."""
    ki = pl.program_id(2)

    @pl.when(ki == 0)
    def _():
        m_scr[...] = jnp.full_like(m_scr, -jnp.inf)
        l_scr[...] = jnp.zeros_like(l_scr)
        acc_scr[...] = jnp.zeros_like(acc_scr)

    q = q_ref[0]                 # (tile_q, C)   Q rows (scale already folded in)
    kv = kv_ref[0]               # (tile_kv, 2C) [K | V] rows
    C = q.shape[-1]
    dh = C // num_heads

    # Per-head 2D dots on column slices of the lane-dense buffers: no (N,H,dh)
    # relayout and never a materialized (H,N,N) attention tensor.
    for h in range(num_heads):
        q_h = q[:, h * dh:(h + 1) * dh]
        k_h = kv[:, h * dh:(h + 1) * dh]
        v_h = kv[:, C + h * dh:C + (h + 1) * dh]

        # s = q_h @ k_h.T without materializing a transpose (contract on dh).
        s = jax.lax.dot_general(q_h, k_h, (((1,), (1,)), ((), ())),
                                preferred_element_type=jnp.float32)   # (tq, tk)

        m_prev = m_scr[h]                                      # (tq, 1) contiguous view
        m_new = jnp.maximum(m_prev, jnp.max(s, axis=-1, keepdims=True))
        alpha = jnp.exp(m_prev - m_new)
        p = jnp.exp(s - m_new)                                 # (tq, tk) f32
        # TODO(synk): on v6e/v7x an exp in bf16 (EUP bf16 path) would ~halve the
        # exp cost when the EUP slot saturates; kept f32 for v5e correctness.
        l_scr[h] = alpha * l_scr[h] + jnp.sum(p, axis=-1, keepdims=True)
        acc_scr[:, h * dh:(h + 1) * dh] = (
            alpha * acc_scr[:, h * dh:(h + 1) * dh]
            + jnp.dot(p.astype(v_h.dtype), v_h, preferred_element_type=jnp.float32))
        m_scr[h] = m_new
    # TODO(synk): attention/output dropout are identity in eval mode; not implemented.

    @pl.when(ki == pl.num_programs(2) - 1)
    def _():
        # Softmax normalization once per q tile; exact reciprocal (epilogue-only).
        for h in range(num_heads):
            inv_l = pl.reciprocal(l_scr[h], approx=False)      # (tq, 1)
            acc_scr[:, h * dh:(h + 1) * dh] *= inv_l
        attn_out = acc_scr[...]                                 # (tq, C) f32

        # Output projection (MXU operands in the weight dtype).
        y = jnp.dot(attn_out.astype(wproj_ref.dtype), wproj_ref[...],
                    preferred_element_type=jnp.float32) + bproj_ref[...].astype(jnp.float32)

        # Residual + LayerNorm in f32, reusing the x tile already resident in VMEM.
        z = x_ref[0].astype(jnp.float32) + y
        mean = jnp.mean(z, axis=-1, keepdims=True)
        var = jnp.mean((z - mean) ** 2, axis=-1, keepdims=True)
        zn = (z - mean) * jax.lax.rsqrt(var + eps)
        o_ref[0] = (zn * gamma_ref[...].astype(jnp.float32)
                    + beta_ref[...].astype(jnp.float32)).astype(o_ref.dtype)


# ------------------------------ wrapper --------------------------------------

def _pick_tile(n):
    # Prefer big row tiles (better HBM roofline, fewer kv re-reads); whole rows
    # for small or irregular N (block == full dim is always legal).
    for t in (512, 256, 128):
        if n % t == 0:
            return t
    return n


def _vmem_limit_bytes():
    # ~75% of physical VMEM, capped: ~96 MiB on v5e/v6e (128 MiB), ~48 MiB on v7x (64 MiB/TC).
    try:
        cap = pltpu.get_tpu_info().vmem_capacity_bytes
    except Exception:
        cap = 64 * 1024 * 1024
    return max(32 * 1024 * 1024, min(int(cap) * 3 // 4, 100 * 1024 * 1024))


def multi_head_attention(x, params, num_heads):
    B, N, C = x.shape
    assert C % num_heads == 0
    dh = C // num_heads
    scale = jnp.asarray(dh ** (-0.5), dtype=params["w_qkv"].dtype)

    tile_q = _pick_tile(N)
    tile_kv = _pick_tile(N)
    vmem_limit = _vmem_limit_bytes()

    # Pre-fold the softmax scale into the Q projection (once, XLA side) and split
    # the fused qkv weights into Q / KV halves so the kernels emit split outputs.
    w_q = params["w_qkv"][:, :C] * scale
    b_q = params["b_qkv"][:, :C] * scale
    w_kv = params["w_qkv"][:, C:]
    b_kv = params["b_qkv"][:, C:]

    # ---- 1) fused Q / KV projection ----
    q_arr, kv_arr = pl.pallas_call(
        qkv_proj_kernel,
        out_shape=(jax.ShapeDtypeStruct((B, N, C), x.dtype),
                   jax.ShapeDtypeStruct((B, N, 2 * C), x.dtype)),
        grid_spec=pltpu.PrefetchScalarGridSpec(
            num_scalar_prefetch=0,
            grid=(B, N // tile_q),
            in_specs=[
                pl.BlockSpec((1, tile_q, C), lambda b, i: (b, i, 0)),    # x row tile
                pl.BlockSpec((C, C), lambda b, i: (0, 0)),               # W_q (invariant)
                pl.BlockSpec((1, C), lambda b, i: (0, 0)),               # b_q
                pl.BlockSpec((C, 2 * C), lambda b, i: (0, 0)),           # W_kv (invariant)
                pl.BlockSpec((1, 2 * C), lambda b, i: (0, 0)),           # b_kv
            ],
            out_specs=[pl.BlockSpec((1, tile_q, C), lambda b, i: (b, i, 0)),
                       pl.BlockSpec((1, tile_q, 2 * C), lambda b, i: (b, i, 0))],
        ),
        compiler_params=pltpu.CompilerParams(
            dimension_semantics=("parallel", "parallel"),
            vmem_limit_bytes=vmem_limit),
    )(x, w_q, b_q, w_kv, b_kv)

    # ---- 2) flash attention + output proj + residual + LayerNorm ----
    kern = functools.partial(flash_attn_kernel, num_heads=num_heads, eps=1e-5)
    return pl.pallas_call(
        kern,
        out_shape=jax.ShapeDtypeStruct((B, N, C), x.dtype),
        grid_spec=pltpu.PrefetchScalarGridSpec(
            num_scalar_prefetch=0,
            grid=(B, N // tile_q, N // tile_kv),        # kv axis innermost (reduction)
            in_specs=[
                pl.BlockSpec((1, tile_q, C), lambda b, qi, ki: (b, qi, 0)),       # Q rows
                pl.BlockSpec((1, tile_kv, 2 * C), lambda b, qi, ki: (b, ki, 0)),  # K/V rows
                pl.BlockSpec((1, tile_q, C), lambda b, qi, ki: (b, qi, 0)),       # x (residual)
                pl.BlockSpec((C, C), lambda b, qi, ki: (0, 0)),                   # W_proj (invariant)
                pl.BlockSpec((1, C), lambda b, qi, ki: (0, 0)),                   # b_proj
                pl.BlockSpec((1, C), lambda b, qi, ki: (0, 0)),                   # gamma
                pl.BlockSpec((1, C), lambda b, qi, ki: (0, 0)),                   # beta
            ],
            out_specs=pl.BlockSpec((1, tile_q, C), lambda b, qi, ki: (b, qi, 0)),
            scratch_shapes=[
                pltpu.VMEM((num_heads, tile_q, 1), jnp.float32),  # m (running max / head)
                pltpu.VMEM((num_heads, tile_q, 1), jnp.float32),  # l (running sum / head)
                pltpu.VMEM((tile_q, C), jnp.float32),             # acc (lane-dense)
            ],
        ),
        compiler_params=pltpu.CompilerParams(
            dimension_semantics=("parallel", "parallel", "arbitrary"),
            vmem_limit_bytes=vmem_limit),
    )(q_arr, kv_arr, x, params["w_proj"], params["b_proj"],
      params["gamma"], params["beta"])


# ------------------------------ reference ------------------------------------

def reference(x, params, num_heads):
    """Pure-JAX reference mirroring the PyTorch forward (eval mode, dropout=identity)."""
    B, N, C = x.shape
    dh = C // num_heads
    scale = dh ** (-0.5)
    hp = jax.lax.Precision.HIGHEST
    qkv = jnp.dot(x, params["w_qkv"], precision=hp) + params["b_qkv"][0]   # (B, N, 3C)
    qkv = qkv.reshape(B, N, 3, num_heads, dh).transpose(2, 0, 3, 1, 4)
    q, k, v = qkv[0], qkv[1], qkv[2]                                       # (B, H, N, dh)
    attn = jnp.einsum('bhnd,bhmd->bhnm', q, k, precision=hp) * scale
    attn = jax.nn.softmax(attn, axis=-1)
    o = jnp.einsum('bhnm,bhmd->bhnd', attn, v, precision=hp)
    o = o.transpose(0, 2, 1, 3).reshape(B, N, C)
    o = jnp.dot(o, params["w_proj"], precision=hp) + params["b_proj"][0]
    z = x + o
    mean = jnp.mean(z, axis=-1, keepdims=True)
    var = jnp.var(z, axis=-1, keepdims=True)
    return (z - mean) / jnp.sqrt(var + 1e-5) * params["gamma"][0] + params["beta"][0]


if __name__ == "__main__":
    B, N, C = 2, 8, 32
    num_heads = 8

    key = jax.random.PRNGKey(0)
    kx, k1, k2, k3, k4 = jax.random.split(key, 5)

    x = jax.random.normal(kx, (B, N, C), dtype=jnp.float32)

    bound = 1.0 / (C ** 0.5)
    params = {
        "w_qkv": jax.random.uniform(k1, (C, 3 * C), jnp.float32, -bound, bound),
        "b_qkv": jax.random.uniform(k2, (1, 3 * C), jnp.float32, -bound, bound),
        "w_proj": jax.random.uniform(k3, (C, C), jnp.float32, -bound, bound),
        "b_proj": jax.random.uniform(k4, (1, C), jnp.float32, -bound, bound),
        "gamma": jnp.ones((1, C), jnp.float32),
        "beta": jnp.zeros((1, C), jnp.float32),
    }

    out = multi_head_attention(x, params, num_heads)
    out = jax.block_until_ready(out)

    ref = reference(x, params, num_heads)
    assert out.shape == (B, N, C)
    # Exact reciprocal in the softmax normalization lets the tolerance come back
    # down from 1e-2; remaining deltas are MXU/XLA f32 rounding differences.
    assert jnp.allclose(out, ref, atol=2e-3, rtol=2e-3), "mismatch vs JAX reference"

    print("KERNEL_OK")
</pallas_src>

<mosaic_0001>
module attributes {stable_mosaic.version = 11 : i64} {
  func.func @qkv_proj_kernel(%arg0: i32, %arg1: i32, %arg2: memref<1x8x32xf32, #tpu.memory_space<vmem>>, %arg3: memref<32x32xf32, #tpu.memory_space<vmem>>, %arg4: memref<1x32xf32, #tpu.memory_space<vmem>>, %arg5: memref<32x64xf32, #tpu.memory_space<vmem>>, %arg6: memref<1x64xf32, #tpu.memory_space<vmem>>, %arg7: memref<1x8x32xf32, #tpu.memory_space<vmem>>, %arg8: memref<1x8x64xf32, #tpu.memory_space<vmem>>) attributes {dimension_semantics = [#tpu.dimension_semantics<parallel>, #tpu.dimension_semantics<parallel>], iteration_bounds = array<i64: 2, 1>, scalar_prefetch = 0 : i64, scratch_operands = 0 : i64, tpu.core_type = #tpu.core_type<tc>, window_params = [{transform_indices = @transform_0, window_bounds = array<i64: 1, 8, 32>}, {pipeline_mode = #tpu.pipeline_mode<synchronous>, transform_indices = @transform_1, window_bounds = array<i64: 32, 32>}, {pipeline_mode = #tpu.pipeline_mode<synchronous>, transform_indices = @transform_2, window_bounds = array<i64: 1, 32>}, {pipeline_mode = #tpu.pipeline_mode<synchronous>, transform_indices = @transform_3, window_bounds = array<i64: 32, 64>}, {pipeline_mode = #tpu.pipeline_mode<synchronous>, transform_indices = @transform_4, window_bounds = array<i64: 1, 64>}, {transform_indices = @transform_5, window_bounds = array<i64: 1, 8, 32>}, {transform_indices = @transform_6, window_bounds = array<i64: 1, 8, 64>}]} {
    %c0 = arith.constant 0 : index
    %c0_0 = arith.constant 0 : index
    %c0_1 = arith.constant 0 : index
    %0 = vector.load %arg2[%c0, %c0_0, %c0_1] : memref<1x8x32xf32, #tpu.memory_space<vmem>>, vector<1x8x32xf32>
    %1 = vector.shape_cast %0 : vector<1x8x32xf32> to vector<8x32xf32>
    %c0_2 = arith.constant 0 : index
    %c0_3 = arith.constant 0 : index
    %2 = vector.load %arg3[%c0_2, %c0_3] : memref<32x32xf32, #tpu.memory_space<vmem>>, vector<32x32xf32>
    %cst = arith.constant dense<0.000000e+00> : vector<8x32xf32>
    %3 = tpu.matmul %1, %2, %cst {dimension_numbers = #tpu.dot_dimension_numbers<[1], [0], [0], [1], [0, 0, 1, 1], [], []>} : vector<8x32xf32>, vector<32x32xf32>, vector<8x32xf32> -> vector<8x32xf32>
    %c0_4 = arith.constant 0 : index
    %c0_5 = arith.constant 0 : index
    %4 = vector.load %arg4[%c0_4, %c0_5] : memref<1x32xf32, #tpu.memory_space<vmem>>, vector<1x32xf32>
    %5 = vector.broadcast %4 : vector<1x32xf32> to vector<8x32xf32>
    %6 = arith.addf %3, %5 : vector<8x32xf32>
    %c0_6 = arith.constant 0 : index
    %c0_7 = arith.constant 0 : index
    %7 = vector.load %arg5[%c0_6, %c0_7] : memref<32x64xf32, #tpu.memory_space<vmem>>, vector<32x64xf32>
    %cst_8 = arith.constant dense<0.000000e+00> : vector<8x64xf32>
    %8 = tpu.matmul %1, %7, %cst_8 {dimension_numbers = #tpu.dot_dimension_numbers<[1], [0], [0], [1], [0, 0, 1, 1], [], []>} : vector<8x32xf32>, vector<32x64xf32>, vector<8x64xf32> -> vector<8x64xf32>
    %c0_9 = arith.constant 0 : index
    %c0_10 = arith.constant 0 : index
    %9 = vector.load %arg6[%c0_9, %c0_10] : memref<1x64xf32, #tpu.memory_space<vmem>>, vector<1x64xf32>
    %10 = vector.broadcast %9 : vector<1x64xf32> to vector<8x64xf32>
    %11 = arith.addf %8, %10 : vector<8x64xf32>
    %c0_11 = arith.constant 0 : index
    %c0_12 = arith.constant 0 : index
    %c0_13 = arith.constant 0 : index
    %12 = vector.load %arg7[%c0_11, %c0_12, %c0_13] : memref<1x8x32xf32, #tpu.memory_space<vmem>>, vector<1x8x32xf32>
    %13 = vector.shape_cast %12 : vector<1x8x32xf32> to vector<8x32xf32>
    %14 = vector.shape_cast %6 : vector<8x32xf32> to vector<1x8x32xf32>
    tpu.vector_store %arg7[%c0_11, %c0_12, %c0_13], %14 {strides = array<i32>} : memref<1x8x32xf32, #tpu.memory_space<vmem>>, vector<1x8x32xf32>,
    %c0_14 = arith.constant 0 : index
    %c0_15 = arith.constant 0 : index
    %c0_16 = arith.constant 0 : index
    %15 = vector.load %arg8[%c0_14, %c0_15, %c0_16] : memref<1x8x64xf32, #tpu.memory_space<vmem>>, vector<1x8x64xf32>
    %16 = vector.shape_cast %15 : vector<1x8x64xf32> to vector<8x64xf32>
    %17 = vector.shape_cast %11 : vector<8x64xf32> to vector<1x8x64xf32>
    tpu.vector_store %arg8[%c0_14, %c0_15, %c0_16], %17 {strides = array<i32>} : memref<1x8x64xf32, #tpu.memory_space<vmem>>, vector<1x8x64xf32>,
    return
  }
  func.func @transform_0(%arg0: i32, %arg1: i32) -> (i32, i32, i32) {
    %c0_i32 = arith.constant 0 : i32
    %c0_i32_0 = arith.constant 0 : i32
    return %arg0, %arg1, %c0_i32 : i32, i32, i32
  }
  func.func @transform_1(%arg0: i32, %arg1: i32) -> (i32, i32) {
    %c0_i32 = arith.constant 0 : i32
    %c0_i32_0 = arith.constant 0 : i32
    %c0_i32_1 = arith.constant 0 : i32
    return %c0_i32, %c0_i32_0 : i32, i32
  }
  func.func @transform_2(%arg0: i32, %arg1: i32) -> (i32, i32) {
    %c0_i32 = arith.constant 0 : i32
    %c0_i32_0 = arith.constant 0 : i32
    %c0_i32_1 = arith.constant 0 : i32
    return %c0_i32, %c0_i32_0 : i32, i32
  }
  func.func @transform_3(%arg0: i32, %arg1: i32) -> (i32, i32) {
    %c0_i32 = arith.constant 0 : i32
    %c0_i32_0 = arith.constant 0 : i32
    %c0_i32_1 = arith.constant 0 : i32
    return %c0_i32, %c0_i32_0 : i32, i32
  }
  func.func @transform_4(%arg0: i32, %arg1: i32) -> (i32, i32) {
    %c0_i32 = arith.constant 0 : i32
    %c0_i32_0 = arith.constant 0 : i32
    %c0_i32_1 = arith.constant 0 : i32
    return %c0_i32, %c0_i32_0 : i32, i32
  }
  func.func @transform_5(%arg0: i32, %arg1: i32) -> (i32, i32, i32) {
    %c0_i32 = arith.constant 0 : i32
    %c0_i32_0 = arith.constant 0 : i32
    return %arg0, %arg1, %c0_i32 : i32, i32, i32
  }
  func.func @transform_6(%arg0: i32, %arg1: i32) -> (i32, i32, i32) {
    %c0_i32 = arith.constant 0 : i32
    %c0_i32_0 = arith.constant 0 : i32
    return %arg0, %arg1, %c0_i32 : i32, i32, i32
  }
}

</mosaic_0001>

<bundles_post_ra>
// kernel: tpu_custom_call.1
= control target key start
LH: loop header
LB: loop body
LE: loop exit
PB: predicated region body
PF: predicated region fallthrough
CT: control target
= control target key end

     0   :  { %12 = vsyncpa [#allocation3], 0  ;;  %s1372_s0 = inlined_call_operand.hbm [shape: f32[2,8,32], index: 0, kind: input, shape index: {}]   ;;  %s1373_s1 = inlined_call_operand.hbm [shape: f32[32,32], index: 1, kind: input, shape index: {}]   ;;  %s1374_s2 = inlined_call_operand.vmem [shape: f32[1,32], index: 2, kind: input, shape index: {}]   ;;  %s1375_s3 = inlined_call_operand.hbm [shape: f32[32,64], index: 3, kind: input, shape index: {}]   ;;  %s1376_s4 = inlined_call_operand.vmem [shape: f32[1,64], index: 4, kind: input, shape index: {}]   ;;  %s1377_s5 = inlined_call_operand.hbm [shape: f32[2,8,32], index: 5, kind: output, shape index: {0}]   ;;  %s1378_s6 = inlined_call_operand.hbm [shape: f32[2,8,64], index: 6, kind: output, shape index: {1}]  }
   0x1   :  { %14 = vsyncpa [#allocation3 + $0x1], 0 }
   0x2   :  { %15 = vsyncpa [#allocation6], 0 }
   0x3   :  { %16 = vsyncpa [#allocation4], 0 }
   0x4   :  { %18 = vsyncpa [#allocation4 + $0x1], 0 }
   0x5   :  { %19 = vsyncpa [#allocation10], 0 }
   0x6   :  { %21 = vsyncpa [#allocation10 + $0x1], 0  ;;  %s1074_s21 = smov 0   ;;  %s1076_s22 = smov 0  }
   0x7   :  { %s1078_s23 = smov 0   ;;  %s1080_s24 = smov 0  }
   0x8   :  { %s1082_s25 = smov 0   ;;  %s1084_s26 = smov 0  }
   0x9 LB: > { %s662_s27 = sadd.s32 4294967295, %s1027_s26   ;;  %s663_s28 = sadd.s32 4294967294, %s1027_s26   ;;  %s1027_s26 = sphi %s1084_s26, %s27_s26   ;;  %s1023_s25 = sphi %s1082_s25, %s1403_s25   ;;  %s1019_s24 = sphi %s1080_s24, %s1402_s24   ;;  %s1015_s23 = sphi %s1078_s23, %s1401_s23   ;;  %s1011_s22 = sphi %s1076_s22, %s1400_s22   ;;  %s1007_s21 = sphi %s1074_s21, %s1399_s21  }
   0xa   : > { %p61_p0 = scmp.ne.s32.totalorder %s1011_s22, %s1007_s21  ;;  %p1108_p1 = scmp.eq.s32.totalorder %s662_s27, 0 }
   0xb   : > { %p1112_p2 = scmp.eq.s32.totalorder %s662_s27, 1  ;;  %p177_p3 = scmp.eq.s32.totalorder %s663_s28, 1 }
   0xc   : > { %s1384_s29 = scalar_select %p1108_p1, 1, 0 }
   0xd   : > { %p1118_p4 = por %p1108_p1, %p61_p0  ;;  %p664_p5 = scmp.ge.s32.totalorder %s1027_s26, 1 }
   0xe   : > { %p1123_p6 = por %p177_p3, %p61_p0  ;;  %p212_p7 = scmp.lt.s32.totalorder %s1027_s26, 3 }
   0xf   : > { %s1386_s7 = scalar_select %p1118_p4, 1, 0 }
  0x10   : > { %s1387_s8 = scalar_select %p1123_p6, 1, 0 }
  0x11   : > { %p1128_p8 = pnand %p664_p5, %p212_p7  ;;  %s1029_s10 = smov [#allocation5]  }
  0x12   : > { %1388 = sst [smem:[#allocation15_spill]] %s1387_s8  ;;  %s224_s11 = sshll.u32 %s1029_s10, 4  ;;  %s1132_s11 = int_to_ptr.vmem [resolvable:$true] %s224_s11 }
  0x13   : > { %p744_p9 = pneg %p1128_p8  ;;  %s1030_s13 = smov [#allocation7]  }
  0x14   : > { %s240_s14 = sshll.u32 %s1030_s13, 4  ;;  %s823_s17 = scalar_lea.hbm %s1373_s1, 512  ;;  %s1143_s14 = int_to_ptr.vmem [resolvable:$true] %s240_s14 }
  0x15   : > { %p1139_p11 = pnand %p744_p9, %p1108_p1  ;;  %p824_p12 = scmp.ne.s32.totalorder %s1373_s1, %s823_s17 }
  0x16   : > { %p830_p5 = scmp.lt.u32.totalorder %s823_s17, %s1373_s1 }
  0x17   : > { %p825_p13 = pneg %p1139_p11 }
  0x19   : > { %p826_p0 = pnand %p825_p13, %p824_p12 }
  0x1b   : > { %p827_p3 = pneg %p826_p0 }
  0x1d   : > { %p832_p7 = pnand %p830_p5, %p827_p3 }
  0x1f   : > { %835 = shalt.err (!%p832_p7)
}
  0x20   : > { %s836_s28 = scalar_lea.vmem %s1132_s11, 512  ;;  %p844_p1 = scmp.lt.s32.totalorder %s1132_s11, %s1132_s11 }
  0x21   : > { %p837_p9 = scmp.ne.s32.totalorder %s1132_s11, %s836_s28  ;;  %p845_p12 = scmp.lt.s32.totalorder %s836_s28, %s836_s28 }
  0x23   : > { %p839_p10 = pnand %p837_p9, %p825_p13  ;;  %p846_p0 = por %p845_p12, %p844_p1 }
  0x25   : > { %p840_p6 = pneg %p839_p10 }
  0x27   : > { %p847_p4 = pnand %p846_p0, %p840_p6 }
  0x29   : > { %850 = shalt.err (!%p847_p4)
}
  0x2a   : > { %s1031_s10 = smov 128   ;;  %s1032_s13 = smov 8  }
  0x2b   : > { %747 = dma.hbm_to_vmem [thread:$0]  (!%p1139_p11), %s1373_s1, 512, %s1132_s11, [#allocation6], %s1031_s10, %s1031_s10, %s1032_s13  }
  0x2c   : > { %s851_s19 = scalar_lea.hbm %s1375_s3, 512 }
  0x2d   : > { %p852_p1 = scmp.ne.s32.totalorder %s1375_s3, %s851_s19  ;;  %p858_p10 = scmp.lt.u32.totalorder %s851_s19, %s1375_s3 }
  0x2f   : > { %p854_p4 = pnand %p852_p1, %p825_p13 }
  0x31   : > { %p855_p6 = pneg %p854_p4 }
  0x33   : > { %p860_p3 = pnand %p858_p10, %p855_p6 }
  0x35   : > { %863 = shalt.err (!%p860_p3)
}
  0x36   : > { %s864_s11 = scalar_lea.vmem %s1143_s14, 512  ;;  %p872_p12 = scmp.lt.s32.totalorder %s1143_s14, %s1143_s14 }
  0x37   : > { %p865_p5 = scmp.ne.s32.totalorder %s1143_s14, %s864_s11  ;;  %p873_p0 = scmp.lt.s32.totalorder %s864_s11, %s864_s11 }
  0x39   : > { %p867_p7 = pnand %p865_p5, %p825_p13  ;;  %p874_p1 = por %p873_p0, %p872_p12 }
  0x3b   : > { %p868_p9 = pneg %p867_p7 }
  0x3d   : > { %p875_p4 = pnand %p874_p1, %p868_p9 }
  0x3f   : > { %878 = shalt.err (!%p875_p4)
}
  0x40   : > { %750 = dma.hbm_to_vmem [thread:$0]  (!%p1139_p11), %s1375_s3, 512, %s1143_s14, [#allocation6], %s1031_s10, %s1031_s10, %s1032_s13  }
  0x41   : > { %s39_s16 = sadd.s32 1, %s1023_s25  ;;  %s48_s17 = sadd.s32 1, %s1015_s23 }
  0x42   : > { %p41_p13 = scmp.ge.s32.totalorder %s39_s16, 2  ;;  %p55_p6 = scmp.ne.s32.totalorder %s1015_s23, %s1011_s22 }
  0x43   : > { %p56_p10 = scmp.eq.s32.totalorder %s1027_s26, 0  ;;  %p764_p3 = scmp.lt.s32.totalorder %s1027_s26, 2 }
  0x44   : > { %s1405_s16 = smov (%p41_p13, %s39_s16), 0  ;;  %p1207_p7 = por %p1112_p2, %p55_p6 }
  0x45   : > { %p57_p5 = por %p56_p10, %p55_p6  ;;  %s43_s18 = ssub.s32 %s1023_s25, %s1405_s16 }
  0x46   : > { %s1391_s12 = scalar_select %p1207_p7, 1, 0 }
  0x47   : > { %s257_s19 = sand.u32 1, %s1015_s23   ;;  %p46_p9 = scmp.eq.s32.totalorder %s43_s18, 0 }
  0x48   : > { %s668_s14 = sshll.u32 %s257_s19, 3  ;;  %s669_s10 = sshll.u32 %s1023_s25, 7 }
  0x49   : > { %s1216_s13 = scalar_select %p46_p9, %s1015_s23, %s48_s17  }
  0x4a   : > { %s1221_s28 = scalar_lea.hbm %s1372_s0, %s669_s10  ;;  %s261_s30 = scalar_lea.vmem [#allocation2], %s668_s14 }
  0x4b   : > { %s269_s11 = sshll.u32 %s261_s30, 4  ;;  %p1225_p2 = pnand %p764_p3, %p57_p5  ;;  %s1229_s11 = int_to_ptr.vmem [resolvable:$true] %s269_s11 }
  0x4c   : > { %s258_s15 = scalar_lea.sflag [#allocation3], %s257_s19  ;;  %s879_s17 = scalar_lea.hbm %s1221_s28, 128 }
  0x4d   : > { %p880_p11 = scmp.ne.s32.totalorder %s1221_s28, %s879_s17  ;;  %p881_p12 = pneg %p1225_p2 }
  0x4e   : > { %s884_s10 = scalar_lea.hbm %s1372_s0, 256  ;;  %p885_p4 = scmp.lt.u32.totalorder %s1221_s28, %s1372_s0 }
  0x4f   : > { %p882_p0 = pnand %p881_p12, %p880_p11  ;;  %p886_p13 = scmp.lt.u32.totalorder %s884_s10, %s879_s17 }
  0x50   : > { %p888_p10 = scmp.lt.u32.totalorder %s879_s17, %s1221_s28 }
  0x51   : > { %p883_p1 = pneg %p882_p0  ;;  %p887_p6 = por %p886_p13, %p885_p4 }
  0x53   : > { %p889_p3 = por %p888_p10, %p887_p6 }
  0x55   : > { %p890_p5 = pnand %p889_p3, %p883_p1 }
  0x57   : > { %893 = shalt.err (!%p890_p5)
}
  0x58   : > { %s894_s19 = scalar_lea.vmem %s1229_s11, 128  ;;  %s1033_s30 = smov [#allocation2]  }
  0x59   : > { %p895_p9 = scmp.ne.s32.totalorder %s1229_s11, %s894_s19  ;;  %s899_s18 = sshll.u32 %s1033_s30, 4  ;;  %s900_s18 = int_to_ptr.vmem [resolvable:$false] %s899_s18 }
  0x5a   : > { %s901_s14 = scalar_lea.vmem %s900_s18, 256  ;;  %p902_p7 = scmp.lt.s32.totalorder %s1229_s11, %s900_s18 }
  0x5b   : > { %p897_p11 = pnand %p895_p9, %p881_p12  ;;  %p903_p4 = scmp.lt.s32.totalorder %s901_s14, %s894_s19 }
  0x5d   : > { %p898_p0 = pneg %p897_p11  ;;  %p904_p13 = por %p903_p4, %p902_p7 }
  0x5f   : > { %p905_p6 = pnand %p904_p13, %p898_p0 }
  0x61   : > { %908 = shalt.err (!%p905_p6)
}
  0x62   : > { %754 = dma.hbm_to_vmem [thread:$0]  (!%p1225_p2), %s1221_s28, 128, %s1229_s11, %s258_s15  }
  0x63   : > { %278 = sbr.rel (%p1128_p8) target bundleno = 372 (0x174), region = 40  ;;  %s1259_s17 = sand.u32 (!%p1128_p8), 1, %s1011_s22  }
  0x64   : > { %s1262_s10 = sshll.u32 (!%p1128_p8), %s1259_s17, 3  ;;  %s281_s20 = scalar_lea.sflag (!%p1128_p8), [#allocation3], %s1259_s17 }
  0x65   : > { %s284_s27 = scalar_lea.vmem (!%p1128_p8), [#allocation2], %s1262_s10  ;;  %p1393_p7 = scmp.ne.s32.totalorder (!%p1128_p8), %s1386_s7, 0 }
  0x6a   : > { %990 = dma.done.wait (%p1393_p7), %s281_s20, 128  }
  0x6b   : > { %992 = vsyncadd (%p1393_p7), %s281_s20, 4294967168  ;;  %p1394_p2 = scmp.ne.s32.totalorder %s1384_s29, 0 }
  0x6d   : > { %994 = dma.done.wait (%p1394_p2), [#allocation6], 1024  }
  0x6e   : > { %996 = vsyncadd (%p1394_p2), [#allocation6], 4294966272  ;;  %v1034_v0 = vmov 0.0|0.0   ;;  %vm1035_vm0 = vmmov 0   ;;  %v1036_v1 = vmov 0.0   ;;  %v327_v2 = vld [vmem:[#allocation5] sm:$0xff] }
  0x6f   : > { %718 = vmatprep.subr.bf16.mxu0 %v1034_v0  ;;  %724 = vmatprep.subr.bf16.mxu1 %v1034_v0  ;;  %v328_v3 = vld [vmem:[#allocation5 + $0x8] sm:$0xff]  ;;  %v412_v4 = vld [vmem:[#allocation7] sm:$0xff]  ;;  %v329_v7 = vld [vmem:[#allocation5 + $0x10] sm:$0xff]  ;;  %vm338_vm1 = vcmask 261120   ;;  %s682_s29 = sshll.u32 %s1019_s24, 7  ;;  %s318_s28 = scalar_lea.vmem [#allocation8], %s1262_s10 }
  0x70   : > { %704 = vmatprep.mubr.msk.f32.mxu0 %vm1035_vm0, %v1036_v1  ;;  %715 = vmatprep.mubr.msk.f32.mxu1 %vm1035_vm0, %v1036_v1  ;;  %v719_v5 = vpack.c.bf16 %v328_v3, %v327_v2  ;;  %v413_v6 = vld [vmem:[#allocation7 + $0x8] sm:$0xff]  ;;  %v330_v8 = vld [vmem:[#allocation5 + $0x18] sm:$0xff]  ;;  %v414_v10 = vld [vmem:[#allocation7 + $0x10] sm:$0xff]  ;;  %s516_s11 = sshll.u32 %s318_s28, 4  ;;  %s325_s19 = scalar_lea.vmem [#allocation9], %s1262_s10  ;;  %vm494_vm2 = vcmask 523264   ;;  %s1292_s11 = int_to_ptr.vmem [resolvable:$true] %s516_s11 }
  0x71   : > { %v725_v9 = vpack.c.bf16 %v413_v6, %v412_v4  ;;  %v415_v11 = vld [vmem:[#allocation7 + $0x18] sm:$0xff]  ;;  %v722_v12 = vpack.c.bf16 %v330_v8, %v329_v7  ;;  %v676_v15 = vld [vmem:[%s1374_s2] ss:$0 sm:$0xff]  ;;  %s530_s30 = sshll.u32 %s325_s19, 4  ;;  %s1290_s24 = scalar_lea.hbm %s1377_s5, %s682_s29  ;;  %s1299_s30 = int_to_ptr.vmem [resolvable:$true] %s530_s30 }
  0x72   : > { %720 = vmatpush3.bf16.msra.mxu0 %v719_v5  ;;  %v728_v13 = vpack.c.bf16 %v415_v11, %v414_v10  ;;  %v326_v14 = vld [vmem:[%s284_s27] sm:$0xff]  ;;  %s1297_s7 = scalar_lea.hbm %s1378_s6, %s682_s29  ;;  %s497_s9 = scalar_lea.sflag [#allocation4], %s1259_s17 }
  0x73   : > { %726 = vmatpush3.bf16.msra.mxu1 %v725_v9  ;;  %721 = vmatprep.subr.bf16.mxu0 %v1034_v0  ;;  %v678_v16 = vld [vmem:[%s1376_s4] ss:$0 sm:$0xff]  ;;  %s909_s8 = scalar_lea.vmem %s1292_s11, 128  ;;  %p1395_p12 = scmp.ne.s32.totalorder %s1391_s12, 0 }
  0x74   : > { %727 = vmatprep.subr.bf16.mxu1 %v1034_v0  ;;  %p910_p8 = scmp.ne.s32.totalorder %s1292_s11, %s909_s8  ;;  %s1037_s15 = smov [#allocation8]  }
  0x75   : > { %s913_s18 = sshll.u32 %s1037_s15, 4  ;;  %s914_s18 = int_to_ptr.vmem [resolvable:$false] %s913_s18 }
  0x76   : > { %723 = vmatpush3.bf16.msra.mxu0 %v722_v12  ;;  %p911_p1 = pnand %p910_p8, %p1395_p12  ;;  %s915_s14 = scalar_lea.vmem %s914_s18, 256 }
  0x77   : > { %729 = vmatpush3.bf16.msra.mxu1 %v728_v13  ;;  %p916_p3 = scmp.lt.s32.totalorder %s1292_s11, %s914_s18  ;;  %p917_p5 = scmp.lt.s32.totalorder %s915_s14, %s909_s8 }
  0x78   : > { %p912_p10 = pneg %p911_p1 }
  0x79   : > { %705 = vmatmul.mubr.msk.f32.vlgmr.msra.gmra.mrb[0].mxu0 %vm338_vm1, %v326_v14  ;;  %p918_p9 = por %p917_p5, %p916_p3 }
  0x7a   : > { %716 = vmatmul.mubr.msk.f32.vlgmr.msra.gmra.mrb[0].mxu1 %vm338_vm1, %v326_v14 }
  0x7b   : > { %p919_p11 = pnand %p918_p9, %p912_p10 }
 0x14c   : > { %v408_v17 = vpop.f32.mrb[0].mxu0 }
 0x14d   : > { %v409_v18 = vadd.f32 %v676_v15, %v408_v17  ;;  %v489_v19 = vpop.f32.mrb[0].mxu1  ;;  %v706_v20 = vpop.f32.mrb[1].mxu0 }
 0x14e   : > { %v490_v21 = vadd.f32 %v678_v16, %v489_v19  ;;  %v717_v22 = vpop.f32.mrb[1].mxu1 }
 0x14f   : > { %493 = vst.msk [vmem:[%s318_s28] sm:$0xff] %vm338_vm1, %v409_v18 }
 0x150   : > { %922 = shalt.err (!%p919_p11)
}
 0x151   : > { %s923_s29 = scalar_lea.hbm %s1290_s24, 128  ;;  %s927_s27 = scalar_lea.hbm %s1377_s5, 256 }
 0x152   : > { %p924_p0 = scmp.ne.s32.totalorder %s1290_s24, %s923_s29  ;;  %p928_p6 = scmp.lt.u32.totalorder %s1290_s24, %s1377_s5 }
 0x153   : > { %p929_p7 = scmp.lt.u32.totalorder %s927_s27, %s923_s29  ;;  %p931_p8 = scmp.lt.u32.totalorder %s923_s29, %s1290_s24 }
 0x154   : > { %p925_p4 = pnand %p924_p0, %p1395_p12 }
 0x155   : > { %p930_p2 = por %p929_p7, %p928_p6 }
 0x156   : > { %p926_p13 = pneg %p925_p4 }
 0x157   : > { %p932_p1 = por %p931_p8, %p930_p2 }
 0x159   : > { %p933_p10 = pnand %p932_p1, %p926_p13 }
 0x15b   : > { %936 = shalt.err (!%p933_p10)
}
 0x15c   : > { %740 = dma.vmem_to_hbm [thread:$0]  (%p1395_p12), %s1292_s11, 128, %s1290_s24, %s497_s9   ;;  %495 = vst.msk [vmem:[%s325_s19] sm:$0xff] %vm494_vm2, %v490_v21 }
 0x15d   : > { %s502_s8 = scalar_lea.sflag [#allocation10], %s1259_s17  ;;  %s937_s14 = scalar_lea.vmem %s1299_s30, 128 }
 0x15e   : > { %p938_p3 = scmp.ne.s32.totalorder %s1299_s30, %s937_s14  ;;  %s1038_s29 = smov [#allocation9]  }
 0x15f   : > { %s941_s28 = sshll.u32 %s1038_s29, 4  ;;  %s942_s28 = int_to_ptr.vmem [resolvable:$false] %s941_s28 }
 0x160   : > { %p939_p5 = pnand %p938_p3, %p1395_p12  ;;  %s943_s20 = scalar_lea.vmem %s942_s28, 256 }
 0x161   : > { %p944_p11 = scmp.lt.s32.totalorder %s1299_s30, %s942_s28  ;;  %p945_p0 = scmp.lt.s32.totalorder %s943_s20, %s937_s14 }
 0x162   : > { %p940_p9 = pneg %p939_p5 }
 0x163   : > { %p946_p4 = por %p945_p0, %p944_p11 }
 0x165   : > { %p947_p13 = pnand %p946_p4, %p940_p9 }
 0x167   : > { %950 = shalt.err (!%p947_p13)
}
 0x168   : > { %s951_s17 = scalar_lea.hbm %s1297_s7, 128  ;;  %s955_s19 = scalar_lea.hbm %s1378_s6, 256 }
 0x169   : > { %p952_p6 = scmp.ne.s32.totalorder %s1297_s7, %s951_s17  ;;  %p956_p8 = scmp.lt.u32.totalorder %s1297_s7, %s1378_s6 }
 0x16a   : > { %p957_p1 = scmp.lt.u32.totalorder %s955_s19, %s951_s17  ;;  %p959_p3 = scmp.lt.u32.totalorder %s951_s17, %s1297_s7 }
 0x16b   : > { %p953_p7 = pnand %p952_p6, %p1395_p12 }
 0x16c   : > { %p958_p10 = por %p957_p1, %p956_p8 }
 0x16d   : > { %p954_p2 = pneg %p953_p7 }
 0x16e   : > { %p960_p5 = por %p959_p3, %p958_p10 }
 0x170   : > { %p961_p9 = pnand %p960_p5, %p954_p2 }
 0x172   : > { %964 = shalt.err (!%p961_p9)
}
 0x173   : > { %741 = dma.vmem_to_hbm [thread:$0]  (%p1395_p12), %s1299_s30, 128, %s1297_s7, %s502_s8  }
 0x174 PF: > { %s1396_s27 = sld [smem:[#allocation15_spill]]  ;;  %s542_s15 = sand.u32 1, %s1007_s21  }
 0x175   : > { %p1398_p0 = scmp.ge.s32.totalorder %s1027_s26, 2  ;;  %s543_s18 = scalar_lea.sflag [#allocation4], %s542_s15 }
 0x17a   : > { %p1397_p11 = scmp.ne.s32.totalorder %s1396_s27, 0 }
 0x17c   : > { %p756_p4 = pnand %p1398_p0, %p1397_p11 }
 0x17e   : > { %998 = dma.done.wait (!%p756_p4), %s543_s18, 128  }
 0x17f   : > { %1000 = vsyncadd (!%p756_p4), %s543_s18, 4294967168  ;;  %s552_s14 = scalar_lea.sflag [#allocation10], %s542_s15 }
 0x180   : > { %1002 = dma.done.wait (!%p756_p4), %s552_s14, 128  }
 0x181   : > { %1004 = vsyncadd (!%p756_p4), %s552_s14, 4294967168  ;;  %s27_s26 = sadd.s32 1, %s1027_s26   ;;  %s1399_s21 = smov %s1011_s22 }
 0x182   : > { %p24_p13 = scmp.ge.s32.totalorder %s27_s26, 4   ;;  %s1400_s22 = smov %s1015_s23 }
 0x183   : > { %s1401_s23 = smov %s1216_s13  ;;  %s1402_s24 = smov %s1023_s25 }
 0x184   : > { %s1403_s25 = smov %s1405_s16  ;;  %26 = sbr.rel (!%p24_p13) target bundleno = 9 (0x9), region = 110 }
 0x18b   :  { %557 = vsyncpa [#allocation3], 1 }
 0x18c   :  { %559 = vsyncpa [#allocation3 + $0x1], 1 }
 0x18d   :  { %560 = vsyncpa [#allocation6], 1 }
 0x18e   :  { %561 = vsyncpa [#allocation4], 1 }
 0x18f   :  { %563 = vsyncpa [#allocation4 + $0x1], 1 }
 0x190   :  { %564 = vsyncpa [#allocation10], 1 }
 0x191   :  { %566 = vsyncpa [#allocation10 + $0x1], 1 }

</bundles_post_ra>
